<compile_context>
chip_gen: v6e
topology: v6e:2x2x1
jax: 0.10.0
libtpu: 0.0.40
codegen_flags: <defaults>
</compile_context>

<pallas_src>
import functools
import math

import jax
import jax.numpy as jnp
from jax.experimental import pallas as pl
from jax.experimental.pallas import tpu as pltpu

NEG_BIG = -9.0e15  # same masking constant as the PyTorch layer


def _round_up(x, m):
    return ((x + m - 1) // m) * m


# -----------------------------------------------------------------------------
# Kernel A:  Wh = h @ W  (bf16 MXU, f32 acc)  and  fg = Wh @ [a1 | a2]
# -----------------------------------------------------------------------------
def _proj_kernel(h_ref, w_ref, a12_ref, wh_ref, fg_ref):
    wh = jnp.dot(h_ref[...], w_ref[...], preferred_element_type=jnp.float32)
    # Single fused 2-wide dot replaces the two (F_out, 1) projections + transpose.
    fg_ref[...] = jnp.dot(wh, a12_ref[...], preferred_element_type=jnp.float32)
    wh_ref[...] = wh.astype(wh_ref.dtype)


# -----------------------------------------------------------------------------
# Kernel B: masked row-softmax(LeakyReLU(f_i + g_j)) @ Wh, online softmax
# -----------------------------------------------------------------------------
def _gat_attention_kernel(f_ref, g_ref, adj_ref, wh_ref, out_ref,
                          m_sc, l_sc, acc_sc, *, alpha, concat):
    j = pl.program_id(1)

    @pl.when(j == 0)
    def _init():
        m_sc[...] = jnp.full(m_sc.shape, -jnp.inf, m_sc.dtype)
        l_sc[...] = jnp.zeros_like(l_sc)
        acc_sc[...] = jnp.zeros_like(acc_sc)

    # e_ij = LeakyReLU(Wh_i.a1 + Wh_j.a2); non-edges -> -9e15 (PyTorch constant).
    e = f_ref[...] + g_ref[...]                     # (bm, 1) + (1, bn) -> (bm, bn)
    e = jnp.where(e > 0, e, alpha * e)              # LeakyReLU(alpha)
    mask = adj_ref[...].astype(jnp.float32) > 0.0   # int8 adjacency stream
    e = jnp.where(mask, e, NEG_BIG)

    # Online (flash-style) softmax update.
    m_prev = m_sc[...]
    m_new = jnp.maximum(m_prev, jnp.max(e, axis=1, keepdims=True))
    corr = jnp.exp(m_prev - m_new)
    p = jnp.exp(e - m_new)
    l_sc[...] = corr * l_sc[...] + jnp.sum(p, axis=1, keepdims=True)
    acc_sc[...] = corr * acc_sc[...] + jnp.dot(
        p.astype(wh_ref.dtype), wh_ref[...], preferred_element_type=jnp.float32)
    m_sc[...] = m_new

    @pl.when(j == pl.num_programs(1) - 1)
    def _finalize():
        h_prime = acc_sc[...] * pl.reciprocal(l_sc[...], approx=True)
        if concat:
            # ELU. exp(x)-1 instead of expm1: the <1.2e-7 difference is far below
            # the bf16 matmul noise floor of this kernel.
            h_prime = jnp.where(h_prime > 0, h_prime, jnp.exp(h_prime) - 1.0)
        out_ref[...] = h_prime.astype(out_ref.dtype)


# -----------------------------------------------------------------------------
# Wrapper
# -----------------------------------------------------------------------------
def graph_attention_layer(h, adj, W, a, *, alpha=0.2, concat=True,
                          block_m=128, block_n=128):
    """Pallas GAT forward. h: [N, F_in], adj: [N, N], W: [F_in, F_out], a: [2*F_out, 1]."""
    N, f_in = h.shape
    f_out = W.shape[1]

    n_pad = _round_up(N, math.lcm(block_m, block_n))
    f_out_pad = _round_up(f_out, 128)   # lane-dense output / MXU-friendly width

    # ---- layout plumbing at the XLA level (pad + cast) ----------------------
    h_p = jnp.pad(h, ((0, n_pad - N), (0, 0))).astype(jnp.bfloat16)
    w_p = jnp.pad(W, ((0, 0), (0, f_out_pad - f_out))).astype(jnp.bfloat16)
    a12 = jnp.zeros((f_out_pad, 2), jnp.float32)
    a12 = a12.at[:f_out, 0].set(a[:f_out, 0].astype(jnp.float32))
    a12 = a12.at[:f_out, 1].set(a[f_out:, 0].astype(jnp.float32))
    adj_p = jnp.pad((adj > 0).astype(jnp.int8), ((0, n_pad - N), (0, n_pad - N)))

    # ---- Kernel A: projection ------------------------------------------------
    wh, fg = pl.pallas_call(
        _proj_kernel,
        grid=(n_pad // block_m,),
        in_specs=[
            pl.BlockSpec((block_m, f_in), lambda i: (i, 0)),
            pl.BlockSpec((f_in, f_out_pad), lambda i: (0, 0)),
            pl.BlockSpec((f_out_pad, 2), lambda i: (0, 0)),
        ],
        out_specs=[
            pl.BlockSpec((block_m, f_out_pad), lambda i: (i, 0)),
            pl.BlockSpec((block_m, 2), lambda i: (i, 0)),
        ],
        out_shape=[
            jax.ShapeDtypeStruct((n_pad, f_out_pad), jnp.bfloat16),
            jax.ShapeDtypeStruct((n_pad, 2), jnp.float32),
        ],
        compiler_params=pltpu.CompilerParams(dimension_semantics=("parallel",)),
    )(h_p, w_p, a12)

    f_col = fg[:, 0:1]                    # (n_pad, 1): Wh_i . a1 per row
    g_row = fg[:, 1].reshape(1, n_pad)    # (1, n_pad): Wh_j . a2, lane-major

    # ---- Kernel B: tiled masked softmax + aggregation ------------------------
    kernel = functools.partial(_gat_attention_kernel,
                               alpha=float(alpha), concat=bool(concat))
    out = pl.pallas_call(
        kernel,
        grid=(n_pad // block_m, n_pad // block_n),
        in_specs=[
            pl.BlockSpec((block_m, 1), lambda i, j: (i, 0)),
            pl.BlockSpec((1, block_n), lambda i, j: (0, j)),
            pl.BlockSpec((block_m, block_n), lambda i, j: (i, j)),
            pl.BlockSpec((block_n, f_out_pad), lambda i, j: (j, 0)),
        ],
        out_specs=pl.BlockSpec((block_m, f_out_pad), lambda i, j: (i, 0)),
        out_shape=jax.ShapeDtypeStruct((n_pad, f_out_pad), jnp.float32),
        scratch_shapes=[
            pltpu.VMEM((block_m, 1), jnp.float32),          # running max
            pltpu.VMEM((block_m, 1), jnp.float32),          # running sum
            pltpu.VMEM((block_m, f_out_pad), jnp.float32),  # accumulator
        ],
        compiler_params=pltpu.CompilerParams(
            dimension_semantics=("parallel", "arbitrary")),
    )(f_col, g_row, adj_p, wh)

    return out[:N, :f_out]


# -----------------------------------------------------------------------------
# Reference + demo
# -----------------------------------------------------------------------------
def _xavier_uniform(key, shape, gain):
    fan_in, fan_out = shape[0], shape[1]
    bound = gain * math.sqrt(6.0 / (fan_in + fan_out))
    return jax.random.uniform(key, shape, jnp.float32, minval=-bound, maxval=bound)


def _reference(h, adj, W, a, alpha, concat):
    # Pure-JAX reference mirroring the PyTorch forward (eval mode).  h @ W uses
    # bf16 inputs / f32 accumulation to match the kernel's MXU precision choice;
    # everything else is f32.
    Wh = jnp.dot(h.astype(jnp.bfloat16), W.astype(jnp.bfloat16),
                 preferred_element_type=jnp.float32)
    f_out = W.shape[1]
    e = Wh @ a[:f_out, :] + (Wh @ a[f_out:, :]).T
    e = jnp.where(e > 0, e, alpha * e)
    att = jnp.where(adj > 0, e, NEG_BIG)
    att = jax.nn.softmax(att, axis=1)
    hp = att @ Wh
    return jax.nn.elu(hp) if concat else hp


if __name__ == "__main__":
    # Small, deterministic problem; N and F_out deliberately not multiples of the
    # tile sizes so the padding path is exercised.
    N, F_IN, F_OUT = 200, 96, 64
    ALPHA = 0.2    # LeakyReLU negative slope
    CONCAT = True  # dropout (0.6 in the PyTorch module) is identity at inference

    key = jax.random.PRNGKey(0)
    k_h, k_adj, k_w, k_a = jax.random.split(key, 4)

    h = jax.random.normal(k_h, (N, F_IN), jnp.float32)
    adj = (jax.random.uniform(k_adj, (N, N)) > 0.7).astype(jnp.float32)
    adj = jnp.maximum(adj, jnp.eye(N, dtype=jnp.float32))  # self loops

    W = _xavier_uniform(k_w, (F_IN, F_OUT), gain=1.414)
    a = _xavier_uniform(k_a, (2 * F_OUT, 1), gain=1.414)

    out = graph_attention_layer(h, adj, W, a, alpha=ALPHA, concat=CONCAT)
    out = jax.block_until_ready(out)

    ref = _reference(h, adj, W, a, ALPHA, CONCAT)
    assert out.shape == (N, F_OUT)
    assert jnp.allclose(out, ref, atol=3e-2, rtol=3e-2), \
        float(jnp.max(jnp.abs(out - ref)))

    print("KERNEL_OK")
</pallas_src>

<mosaic_0001>
module attributes {stable_mosaic.version = 11 : i64} {
  func.func @_proj_kernel(%arg0: i32, %arg1: memref<128x96xbf16, #tpu.memory_space<vmem>>, %arg2: memref<96x128xbf16, #tpu.memory_space<vmem>>, %arg3: memref<128x2xf32, #tpu.memory_space<vmem>>, %arg4: memref<128x128xbf16, #tpu.memory_space<vmem>>, %arg5: memref<128x2xf32, #tpu.memory_space<vmem>>) attributes {dimension_semantics = [#tpu.dimension_semantics<parallel>], iteration_bounds = array<i64: 2>, scalar_prefetch = 0 : i64, scratch_operands = 0 : i64, tpu.core_type = #tpu.core_type<tc>, window_params = [{transform_indices = @transform_0, window_bounds = array<i64: 128, 96>}, {pipeline_mode = #tpu.pipeline_mode<synchronous>, transform_indices = @transform_1, window_bounds = array<i64: 96, 128>}, {pipeline_mode = #tpu.pipeline_mode<synchronous>, transform_indices = @transform_2, window_bounds = array<i64: 128, 2>}, {transform_indices = @transform_3, window_bounds = array<i64: 128, 128>}, {transform_indices = @transform_4, window_bounds = array<i64: 128, 2>}]} {
    %c0 = arith.constant 0 : index
    %c0_0 = arith.constant 0 : index
    %0 = vector.load %arg1[%c0, %c0_0] : memref<128x96xbf16, #tpu.memory_space<vmem>>, vector<128x96xbf16>
    %c0_1 = arith.constant 0 : index
    %c0_2 = arith.constant 0 : index
    %1 = vector.load %arg2[%c0_1, %c0_2] : memref<96x128xbf16, #tpu.memory_space<vmem>>, vector<96x128xbf16>
    %cst = arith.constant dense<0.000000e+00> : vector<128x128xf32>
    %2 = tpu.matmul %0, %1, %cst {dimension_numbers = #tpu.dot_dimension_numbers<[1], [0], [0], [1], [0, 0, 1, 1], [], []>} : vector<128x96xbf16>, vector<96x128xbf16>, vector<128x128xf32> -> vector<128x128xf32>
    %c0_3 = arith.constant 0 : index
    %c0_4 = arith.constant 0 : index
    %3 = vector.load %arg3[%c0_3, %c0_4] : memref<128x2xf32, #tpu.memory_space<vmem>>, vector<128x2xf32>
    %cst_5 = arith.constant dense<0.000000e+00> : vector<128x2xf32>
    %4 = tpu.matmul %2, %3, %cst_5 {dimension_numbers = #tpu.dot_dimension_numbers<[1], [0], [0], [1], [0, 0, 1, 1], [], []>} : vector<128x128xf32>, vector<128x2xf32>, vector<128x2xf32> -> vector<128x2xf32>
    %c0_6 = arith.constant 0 : index
    %c0_7 = arith.constant 0 : index
    %5 = vector.load %arg5[%c0_6, %c0_7] : memref<128x2xf32, #tpu.memory_space<vmem>>, vector<128x2xf32>
    tpu.vector_store %arg5[%c0_6, %c0_7], %4 {strides = array<i32>} : memref<128x2xf32, #tpu.memory_space<vmem>>, vector<128x2xf32>,
    %6 = arith.truncf %2 : vector<128x128xf32> to vector<128x128xbf16>
    %c0_8 = arith.constant 0 : index
    %c0_9 = arith.constant 0 : index
    %7 = vector.load %arg4[%c0_8, %c0_9] : memref<128x128xbf16, #tpu.memory_space<vmem>>, vector<128x128xbf16>
    tpu.vector_store %arg4[%c0_8, %c0_9], %6 {strides = array<i32>} : memref<128x128xbf16, #tpu.memory_space<vmem>>, vector<128x128xbf16>,
    return
  }
  func.func @transform_0(%arg0: i32) -> (i32, i32) {
    %c0_i32 = arith.constant 0 : i32
    %c0_i32_0 = arith.constant 0 : i32
    return %arg0, %c0_i32 : i32, i32
  }
  func.func @transform_1(%arg0: i32) -> (i32, i32) {
    %c0_i32 = arith.constant 0 : i32
    %c0_i32_0 = arith.constant 0 : i32
    %c0_i32_1 = arith.constant 0 : i32
    return %c0_i32, %c0_i32_0 : i32, i32
  }
  func.func @transform_2(%arg0: i32) -> (i32, i32) {
    %c0_i32 = arith.constant 0 : i32
    %c0_i32_0 = arith.constant 0 : i32
    %c0_i32_1 = arith.constant 0 : i32
    return %c0_i32, %c0_i32_0 : i32, i32
  }
  func.func @transform_3(%arg0: i32) -> (i32, i32) {
    %c0_i32 = arith.constant 0 : i32
    %c0_i32_0 = arith.constant 0 : i32
    return %arg0, %c0_i32 : i32, i32
  }
  func.func @transform_4(%arg0: i32) -> (i32, i32) {
    %c0_i32 = arith.constant 0 : i32
    %c0_i32_0 = arith.constant 0 : i32
    return %arg0, %c0_i32 : i32, i32
  }
}

</mosaic_0001>

<bundles_post_ra>
// kernel: tpu_custom_call.1
= control target key start
LH: loop header
LB: loop body
LE: loop exit
PB: predicated region body
PF: predicated region fallthrough
CT: control target
= control target key end

     0   :  { %10 = vsyncpa [#allocation3], 0  ;;  %s1472_s0 = inlined_call_operand.vmem [shape: bf16[256,96], index: 0, kind: input, shape index: {}]   ;;  %s1473_s1 = inlined_call_operand.vmem [shape: bf16[96,128], index: 1, kind: input, shape index: {}]   ;;  %s1474_s2 = inlined_call_operand.vmem [shape: f32[128,2], index: 2, kind: input, shape index: {}]   ;;  %s1475_s3 = inlined_call_operand.hbm [shape: bf16[256,128], index: 3, kind: output, shape index: {0}]   ;;  %s1476_s4 = inlined_call_operand.vmem [shape: f32[256,2], index: 4, kind: output, shape index: {1}]  }
   0x1   :  { %12 = vsyncpa [#allocation3 + $0x1], 0  ;;  %s1231_s15 = smov 0   ;;  %s1233_s16 = smov 0  }
   0x2   :  { %s1235_s17 = smov 0   ;;  %s1237_s18 = smov 0  }
   0x3 LB: > { %s1252_s19 = sadd.s32 4294967295, %s1201_s18   ;;  %s808_s20 = sadd.s32 4294967294, %s1201_s18   ;;  %s1201_s18 = sphi %s1237_s18, %s1482_s18   ;;  %s1197_s17 = sphi %s1235_s17, %s1481_s17   ;;  %s1193_s16 = sphi %s1233_s16, %s1480_s16   ;;  %s1189_s15 = sphi %s1231_s15, %s1479_s15  }
   0x4   : > { %s1256_s21 = sadd.s32 1, %s1201_s18   ;;  %s93_s22 = sadd.s32 1, %s1197_s17 }
   0x5   : > { %s90_s23 = ssub.s32 %s1201_s18, %s1256_s21  ;;  %p103_p0 = scmp.ne.s32.totalorder %s1197_s17, %s1193_s16 }
   0x6   : > { %p91_p1 = scmp.eq.s32.totalorder %s90_s23, 0  ;;  %p104_p2 = scmp.eq.s32.totalorder %s1252_s19, 1 }
   0x7   : > { %p109_p3 = scmp.ne.s32.totalorder %s1193_s16, %s1189_s15  ;;  %p110_p4 = scmp.eq.s32.totalorder %s808_s20, 1 }
   0x8   : > { %s1267_s24 = scalar_select %p91_p1, %s1197_s17, %s93_s22  }
   0x9   : > { %p1269_p5 = por %p104_p2, %p103_p0  ;;  %p1273_p6 = por %p110_p4, %p109_p3 }
   0xa   : > { %p811_p7 = scmp.ge.s32.totalorder %s1201_s18, 1  ;;  %p169_p8 = scmp.lt.s32.totalorder %s1201_s18, 3 }
   0xc   : > { %p170_p9 = pnand %p811_p7, %p169_p8 }
   0xd   : > { %s813_s29 = sshll.u32 (!%p170_p9), %s1252_s19, 4  ;;  %s190_s28 = sand.u32 (!%p170_p9), 1, %s1193_s16  }
   0xe   : > { %173 = sbr.rel (%p170_p9) target bundleno = 467 (0x1d3), region = 32  ;;  %p201_p10 = scmp.lt.s32.totalorder (!%p170_p9), %s813_s29, 31 }
   0xf   : > { %s812_s30 = sshll.u32 (!%p170_p9), %s190_s28, 6  ;;  %s876_s6 = sshll.u32 (!%p170_p9), %s1252_s19, 10 }
  0x10   : > { %s1373_s5 = scalar_lea.vmem (!%p170_p9), [#allocation2], %s812_s30  ;;  %s1388_s10 = scalar_lea.hbm (!%p170_p9), %s1475_s3, %s876_s6 }
  0x11   : > { %s717_s7 = sshll.u32 (!%p170_p9), %s1373_s5, 4  ;;  %s1394_s11 = scalar_lea.sflag (!%p170_p9), [#allocation3], %s190_s28  ;;  %s1390_s7 = int_to_ptr.vmem [resolvable:$true] %s717_s7 }
  0x12   : > { %s1141_s12 = scalar_lea.vmem (!%p170_p9), %s1390_s7, 1024  ;;  %s1203_s19 = smov (!%p170_p9), [#allocation2]  }
  0x13   : > { %v1127_v0 = vld [vmem:[%s1473_s1 + $0x28] sm:$0xff]   ;;  %v1128_v1 = vld [vmem:[%s1473_s1 + $0x20] sm:$0xff]   ;;  %s1484_s29 = smov (!%p201_p10, %s813_s29), 31  ;;  %v1129_v2 = vld [vmem:[%s1473_s1 + $0x18] sm:$0xff]   ;;  %vm318_vm0 = vcmask 785408   ;;  %p1142_p11 = scmp.ne.s32.totalorder %s1390_s7, %s1141_s12 }
  0x14   : > { %970 = vmatprep.subr.bf16.mxu0 %v1127_v0  ;;  %s814_s8 = sshll.u32 %s1484_s29, 2  ;;  %v1130_v3 = vld [vmem:[%s1473_s1 + $0x10] sm:$0xff]   ;;  %v455_v4 = vld [vmem:[%s1474_s2 + $0x78] sm:$0xff]  ;;  %v453_v7 = vld [vmem:[%s1474_s2 + $0x68] sm:$0xff]  ;;  %s1145_s14 = sshll.u32 %s1203_s19, 4  ;;  %s1146_s14 = int_to_ptr.vmem [resolvable:$false] %s1145_s14 }
  0x15   : > { %971 = vmatpush3.bf16.msra.mxu0 %v1127_v0  ;;  %s1298_s13 = scalar_lea.vmem %s1472_s0, %s814_s8  ;;  %v454_v5 = vld [vmem:[%s1474_s2 + $0x70] sm:$0xff]  ;;  %1054 = vmatprep.subr.mxu1 %v455_v4  ;;  %v1131_v8 = vld [vmem:[%s1473_s1 + $0x8] sm:$0xff]   ;;  %v452_v9 = vld [vmem:[%s1474_s2 + $0x60] sm:$0xff]  ;;  %p1143_p12 = pnand %p1142_p11, %p1269_p5 }
  0x16   : > { %972 = vmatprep.subr.bf16.mxu0 %v1128_v1  ;;  %v1133_v6 = vld [vmem:[%s1298_s13] sm:$0xff]   ;;  %1070 = vmatpush3.msra.mxu1 %v455_v4  ;;  %v451_v10 = vld [vmem:[%s1474_s2 + $0x58] sm:$0xff]  ;;  %v450_v12 = vld [vmem:[%s1474_s2 + $0x50] sm:$0xff]  ;;  %s1147_s20 = scalar_lea.vmem %s1146_s14, 2048  ;;  %p1148_p0 = scmp.lt.s32.totalorder %s1390_s7, %s1146_s14 }
  0x17   : > { %982 = vmatprep.mubr.msk.bf16.mxu0 %vm318_vm0, %v1133_v6  ;;  %1055 = vmatprep.subr.mxu1 %v454_v5  ;;  %v1132_v11 = vld [vmem:[%s1473_s1] sm:$0xff]   ;;  %v449_v13 = vld [vmem:[%s1474_s2 + $0x48] sm:$0xff]  ;;  %v1135_v16 = vld [vmem:[%s1298_s13 + $0x10] sm:$0xff]   ;;  %p1144_p13 = pneg %p1143_p12  ;;  %p1149_p1 = scmp.lt.s32.totalorder %s1147_s20, %s1141_s12 }
  0x18   : > { %1071 = vmatpush3.msra.mxu1 %v454_v5  ;;  %v448_v14 = vld [vmem:[%s1474_s2 + $0x40] sm:$0xff]  ;;  %v1134_v15 = vld [vmem:[%s1298_s13 + $0x8] sm:$0xff]   ;;  %v447_v17 = vld [vmem:[%s1474_s2 + $0x38] sm:$0xff] }
  0x19   : > { %973 = vmatpush3.bf16.msra.mxu0 %v1128_v1  ;;  %1056 = vmatprep.subr.mxu1 %v453_v7  ;;  %v446_v18 = vld [vmem:[%s1474_s2 + $0x30] sm:$0xff]  ;;  %v445_v19 = vld [vmem:[%s1474_s2 + $0x28] sm:$0xff]  ;;  %v1136_v20 = vld [vmem:[%s1298_s13 + $0x18] sm:$0xff]   ;;  %p1150_p2 = por %p1149_p1, %p1148_p0 }
  0x1a   : > { %974 = vmatprep.subr.bf16.mxu0 %v1129_v2  ;;  %1072 = vmatpush3.msra.mxu1 %v453_v7  ;;  %v444_v21 = vld [vmem:[%s1474_s2 + $0x20] sm:$0xff]  ;;  %v443_v23 = vld [vmem:[%s1474_s2 + $0x18] sm:$0xff]  ;;  %v442_v24 = vld [vmem:[%s1474_s2 + $0x10] sm:$0xff] }
  0x1b   : > { %1057 = vmatprep.subr.mxu1 %v452_v9  ;;  %v1137_v22 = vld [vmem:[%s1298_s13 + $0x20] sm:$0xff]   ;;  %v1138_v25 = vld [vmem:[%s1298_s13 + $0x28] sm:$0xff]   ;;  %v1139_v26 = vld [vmem:[%s1298_s13 + $0x30] sm:$0xff]   ;;  %p1151_p3 = pnand %p1150_p2, %p1144_p13 }
  0x1c   : > { %1073 = vmatpush3.msra.mxu1 %v452_v9  ;;  %v1140_v27 = vld [vmem:[%s1298_s13 + $0x38] sm:$0xff]   ;;  %v441_v28 = vld [vmem:[%s1474_s2 + $0x8] sm:$0xff]  ;;  %v440_v29 = vld [vmem:[%s1474_s2] sm:$0xff] }
  0x1d   : > { %975 = vmatpush3.bf16.msra.mxu0 %v1129_v2  ;;  %1058 = vmatprep.subr.mxu1 %v451_v10 }
  0x1e   : > { %976 = vmatprep.subr.bf16.mxu0 %v1130_v3  ;;  %1074 = vmatpush3.msra.mxu1 %v451_v10 }
  0x1f   : > { %1059 = vmatprep.subr.mxu1 %v450_v12 }
  0x20   : > { %1075 = vmatpush3.msra.mxu1 %v450_v12 }
  0x21   : > { %977 = vmatpush3.bf16.msra.mxu0 %v1130_v3  ;;  %1060 = vmatprep.subr.mxu1 %v449_v13 }
  0x22   : > { %978 = vmatprep.subr.bf16.mxu0 %v1131_v8  ;;  %1076 = vmatpush3.msra.mxu1 %v449_v13 }
  0x23   : > { %1061 = vmatprep.subr.mxu1 %v448_v14 }
  0x24   : > { %1077 = vmatpush3.msra.mxu1 %v448_v14 }
  0x25   : > { %979 = vmatpush3.bf16.msra.mxu0 %v1131_v8  ;;  %1062 = vmatprep.subr.mxu1 %v447_v17 }
  0x26   : > { %980 = vmatprep.subr.bf16.mxu0 %v1132_v11  ;;  %1078 = vmatpush3.msra.mxu1 %v447_v17 }
  0x27   : > { %1063 = vmatprep.subr.mxu1 %v446_v18 }
  0x28   : > { %1079 = vmatpush3.msra.mxu1 %v446_v18 }
  0x29   : > { %981 = vmatpush3.bf16.msra.mxu0 %v1132_v11  ;;  %1064 = vmatprep.subr.mxu1 %v445_v19 }
  0x2a   : > { %998 = vmatprep.subr.mxu0 %v455_v4  ;;  %1080 = vmatpush3.msra.mxu1 %v445_v19 }
  0x2b   : > { %1065 = vmatprep.subr.mxu1 %v444_v21 }
  0x2c   : > { %983 = vmatmul.mubr.msk.bf16.vlgmr.msra.gmra.mxu0 %vm318_vm0, %v1134_v15  ;;  %1081 = vmatpush3.msra.mxu1 %v444_v21 }
  0x2d   : > { %986 = vmatprep.mubr.msk.bf16.mxu0 %vm318_vm0, %v1135_v16  ;;  %999 = vmatpush3.msra.mxu0 %v455_v4 }
  0x2e   : > { %1000 = vmatprep.subr.mxu0 %v454_v5  ;;  %1066 = vmatprep.subr.mxu1 %v443_v23 }
  0x2f   : > { %1001 = vmatpush3.msra.mxu0 %v454_v5  ;;  %1082 = vmatpush3.msra.mxu1 %v443_v23 }
  0x30   : > { %1002 = vmatprep.subr.mxu0 %v453_v7  ;;  %1067 = vmatprep.subr.mxu1 %v442_v24 }
  0x31   : > { %1003 = vmatpush3.msra.mxu0 %v453_v7  ;;  %1083 = vmatpush3.msra.mxu1 %v442_v24 }
  0x32   : > { %1004 = vmatprep.subr.mxu0 %v452_v9  ;;  %1068 = vmatprep.subr.mxu1 %v441_v28 }
  0x33   : > { %1005 = vmatpush3.msra.mxu0 %v452_v9  ;;  %1084 = vmatpush3.msra.mxu1 %v441_v28 }
  0x34   : > { %987 = vmatmul.mubr.msk.bf16.gmra.mxu0 %vm318_vm0, %v1136_v20  ;;  %1006 = vmatprep.subr.mxu0 %v451_v10 }
  0x35   : > { %990 = vmatprep.mubr.msk.bf16.mxu0 %vm318_vm0, %v1137_v22  ;;  %1007 = vmatpush3.msra.mxu0 %v451_v10 }
  0x36   : > { %1008 = vmatprep.subr.mxu0 %v450_v12  ;;  %1069 = vmatprep.subr.mxu1 %v440_v29 }
  0x37   : > { %1009 = vmatpush3.msra.mxu0 %v450_v12  ;;  %1085 = vmatpush3.msra.mxu1 %v440_v29 }
  0x38   : > { %1010 = vmatprep.subr.mxu0 %v449_v13 }
  0x39   : > { %1011 = vmatpush3.msra.mxu0 %v449_v13 }
  0x3a   : > { %1012 = vmatprep.subr.mxu0 %v448_v14 }
  0x3b   : > { %1013 = vmatpush3.msra.mxu0 %v448_v14 }
  0x3c   : > { %991 = vmatmul.mubr.msk.bf16.gmra.mxu0 %vm318_vm0, %v1138_v25  ;;  %1014 = vmatprep.subr.mxu0 %v447_v17 }
  0x3d   : > { %994 = vmatprep.mubr.msk.bf16.mxu0 %vm318_vm0, %v1139_v26  ;;  %1015 = vmatpush3.msra.mxu0 %v447_v17 }
  0x3e   : > { %1016 = vmatprep.subr.mxu0 %v446_v18 }
  0x3f   : > { %1017 = vmatpush3.msra.mxu0 %v446_v18 }
  0x40   : > { %1018 = vmatprep.subr.mxu0 %v445_v19 }
  0x41   : > { %1019 = vmatpush3.msra.mxu0 %v445_v19 }
  0x42   : > { %1020 = vmatprep.subr.mxu0 %v444_v21 }
  0x43   : > { %1021 = vmatpush3.msra.mxu0 %v444_v21 }
  0x44   : > { %995 = vmatmul.mubr.msk.bf16.gmra.mxu0 %vm318_vm0, %v1140_v27  ;;  %1022 = vmatprep.subr.mxu0 %v443_v23 }
  0x45   : > { %1023 = vmatpush3.msra.mxu0 %v443_v23 }
  0x46   : > { %1024 = vmatprep.subr.mxu0 %v442_v24 }
  0x47   : > { %1025 = vmatpush3.msra.mxu0 %v442_v24 }
  0x48   : > { %1026 = vmatprep.subr.mxu0 %v441_v28 }
  0x49   : > { %1027 = vmatpush3.msra.mxu0 %v441_v28 }
  0x4a   : > { %1028 = vmatprep.subr.mxu0 %v440_v29 }
  0x4b   : > { %1029 = vmatpush3.msra.mxu0 %v440_v29 }
  0xec   : > { %v984_v30 = vpop.f32.mrf.mxu0 }
  0xed   : > { %1033 = vmatprep.mubr.f32.mxu1 %v984_v30 }
  0xee   : > { %v377_v31 = vpop.f32.mrf.mxu0 }
  0xef   : > { %1030 = vmatprep.mubr.f32.mxu0 %v377_v31 }
  0xf0   : > { %v985_v32 = vpop.f32.mrf.mxu0 }
  0xf1   : > { %v885_v33 = vpack.c.bf16 %v985_v32, %v984_v30  ;;  %1034 = vmatmul.mubr.f32.vlgmr.msra.gmra.mxu1 %v985_v32 }
  0xf2   : > { %v380_v34 = vpop.f32.mrf.mxu0 }
  0xf3   : > { %917 = vst [vmem:[%s1373_s5 + $0x8] sm:$0xff] %v885_v33   ;;  %v880_v35 = vpack.c.bf16 %v380_v34, %v377_v31  ;;  %1031 = vmatmul.mubr.f32.vlgmr.msra.gmra.mxu0 %v380_v34 }
  0xf4   : > { %v988_v36 = vpop.f32.mrf.mxu0 }
  0xf5   : > { %881 = vst [vmem:[%s1373_s5] sm:$0xff] %v880_v35  }
  0xf6   : > { %v393_v37 = vpop.f32.mrf.mxu0 }
  0xf7   : > { %1036 = vmatprep.mubr.f32.mxu1 %v393_v37 }
  0xf8   : > { %v989_v38 = vpop.f32.mrf.mxu0 }
  0xf9   : > { %v895_v39 = vpack.c.bf16 %v989_v38, %v988_v36 }
  0xfa   : > { %v396_v40 = vpop.f32.mrf.mxu0 }
  0xfb   : > { %919 = vst [vmem:[%s1373_s5 + $0x18] sm:$0xff] %v895_v39   ;;  %v890_v41 = vpack.c.bf16 %v396_v40, %v393_v37  ;;  %1037 = vmatmul.mubr.f32.gmra.mxu1 %v396_v40 }
  0xfc   : > { %v992_v42 = vpop.f32.mrf.mxu0  ;;  %1039 = vmatprep.mubr.f32.mxu1 %v988_v36 }
  0xfd   : > { %918 = vst [vmem:[%s1373_s5 + $0x10] sm:$0xff] %v890_v41  }
  0xfe   : > { %v409_v43 = vpop.f32.mrf.mxu0 }
  0xff   : > { %1040 = vmatmul.mubr.f32.gmra.mxu1 %v989_v38 }
 0x100   : > { %v993_v44 = vpop.f32.mrf.mxu0  ;;  %1042 = vmatprep.mubr.f32.mxu1 %v409_v43 }
 0x101   : > { %v905_v45 = vpack.c.bf16 %v993_v44, %v992_v42 }
 0x102   : > { %v412_v46 = vpop.f32.mrf.mxu0 }
 0x103   : > { %921 = vst [vmem:[%s1373_s5 + $0x28] sm:$0xff] %v905_v45   ;;  %v900_v47 = vpack.c.bf16 %v412_v46, %v409_v43  ;;  %1043 = vmatmul.mubr.f32.gmra.mxu1 %v412_v46 }
 0x104   : > { %v996_v48 = vpop.f32.mrf.mxu0  ;;  %1045 = vmatprep.mubr.f32.mxu1 %v992_v42 }
 0x105   : > { %920 = vst [vmem:[%s1373_s5 + $0x20] sm:$0xff] %v900_v47  }
 0x106   : > { %v425_v49 = vpop.f32.mrf.mxu0 }
 0x107   : > { %1046 = vmatmul.mubr.f32.gmra.mxu1 %v993_v44 }
 0x108   : > { %v997_v50 = vpop.f32.mrf.mxu0  ;;  %1048 = vmatprep.mubr.f32.mxu1 %v425_v49 }
 0x109   : > { %v915_v51 = vpack.c.bf16 %v997_v50, %v996_v48 }
 0x10a   : > { %v428_v52 = vpop.f32.mrf.mxu0 }
 0x10b   : > { %923 = vst [vmem:[%s1373_s5 + $0x38] sm:$0xff] %v915_v51   ;;  %v910_v53 = vpack.c.bf16 %v428_v52, %v425_v49  ;;  %1049 = vmatmul.mubr.f32.gmra.mxu1 %v428_v52 }
 0x10c   : > { %1051 = vmatprep.mubr.f32.mxu1 %v996_v48 }
 0x10d   : > { %922 = vst [vmem:[%s1373_s5 + $0x30] sm:$0xff] %v910_v53  }
 0x10f   : > { %1052 = vmatmul.mubr.f32.gmra.mxu1 %v997_v50 }
 0x110   : > { %1154 = shalt.err (!%p1151_p3)
}
 0x111   : > { %s1155_s22 = scalar_lea.hbm %s1388_s10, 1024  ;;  %s1159_s27 = scalar_lea.hbm %s1475_s3, 2048 }
 0x112   : > { %p1156_p4 = scmp.ne.s32.totalorder %s1388_s10, %s1155_s22  ;;  %p1160_p9 = scmp.lt.s32.totalorder %s1388_s10, %s1475_s3 }
 0x113   : > { %p1161_p10 = scmp.lt.s32.totalorder %s1159_s27, %s1155_s22 }
 0x114   : > { %p1157_p7 = pnand %p1156_p4, %p1269_p5 }
 0x115   : > { %p1162_p11 = por %p1161_p10, %p1160_p9 }
 0x116   : > { %p1158_p8 = pneg %p1157_p7 }
 0x118   : > { %p1163_p12 = pnand %p1162_p11, %p1158_p8 }
 0x11a   : > { %1166 = shalt.err (!%p1163_p12)
}
 0x11b   : > { %s1204_s5 = smov 64   ;;  %s1205_s6 = smov 4   ;;  %vm601_vm1 = vcmask 15360  }
 0x11c   : > { %1086 = dma.vmem_to_hbm [thread:$0]  (%p1269_p5), %s1390_s7, 1024, %s1388_s10, %s1394_s11, %s1204_s5, %s1204_s5, %s1205_s6  }
 0x11d   : > { %s816_s8 = sshll.u32 %s1484_s29, 3 }
 0x11e   : > { %s1421_s19 = scalar_lea.vmem %s1476_s4, %s816_s8 }
 0x1b1   : > { %v1035_v54 = vpop.f32.mrf.mxu1 }
 0x1b2   : > { %605 = vst.msk [vmem:[%s1421_s19 + $0x18] sm:$0xff] %vm601_vm1, %v1035_v54 }
 0x1b3   : > { %v1032_v55 = vpop.f32.mrf.mxu0  ;;  %v532_v56 = vpop.f32.mrf.mxu1 }
 0x1b4   : > { %603 = vst.msk [vmem:[%s1421_s19 + $0x8] sm:$0xff] %vm601_vm1, %v1032_v55  ;;  %604 = vst.msk [vmem:[%s1421_s19 + $0x10] sm:$0xff] %vm601_vm1, %v532_v56 }
 0x1b5   : > { %v522_v57 = vpop.f32.mrf.mxu0 }
 0x1b6   : > { %602 = vst.msk [vmem:[%s1421_s19] sm:$0xff] %vm601_vm1, %v522_v57 }
 0x1bb   : > { %v1038_v58 = vpop.f32.mrf.mxu1 }
 0x1bc   : > { %607 = vst.msk [vmem:[%s1421_s19 + $0x28] sm:$0xff] %vm601_vm1, %v1038_v58 }
 0x1bd   : > { %v542_v59 = vpop.f32.mrf.mxu1 }
 0x1be   : > { %606 = vst.msk [vmem:[%s1421_s19 + $0x20] sm:$0xff] %vm601_vm1, %v542_v59 }
 0x1bf   : > { %v1041_v60 = vpop.f32.mrf.mxu1 }
 0x1c0   : > { %609 = vst.msk [vmem:[%s1421_s19 + $0x38] sm:$0xff] %vm601_vm1, %v1041_v60 }
 0x1c1   : > { %v552_v61 = vpop.f32.mrf.mxu1 }
 0x1c2   : > { %608 = vst.msk [vmem:[%s1421_s19 + $0x30] sm:$0xff] %vm601_vm1, %v552_v61 }
 0x1c3   : > { %v1044_v62 = vpop.f32.mrf.mxu1 }
 0x1c4   : > { %611 = vst.msk [vmem:[%s1421_s19 + $0x48] sm:$0xff] %vm601_vm1, %v1044_v62 }
 0x1c5   : > { %v562_v63 = vpop.f32.mrf.mxu1 }
 0x1c6   : > { %610 = vst.msk [vmem:[%s1421_s19 + $0x40] sm:$0xff] %vm601_vm1, %v562_v63 }
 0x1c7   : > { %v1047_v0 = vpop.f32.mrf.mxu1 }
 0x1c8   : > { %613 = vst.msk [vmem:[%s1421_s19 + $0x58] sm:$0xff] %vm601_vm1, %v1047_v0 }
 0x1c9   : > { %v572_v1 = vpop.f32.mrf.mxu1 }
 0x1ca   : > { %612 = vst.msk [vmem:[%s1421_s19 + $0x50] sm:$0xff] %vm601_vm1, %v572_v1 }
 0x1cb   : > { %v1050_v2 = vpop.f32.mrf.mxu1 }
 0x1cc   : > { %615 = vst.msk [vmem:[%s1421_s19 + $0x68] sm:$0xff] %vm601_vm1, %v1050_v2 }
 0x1cd   : > { %v582_v3 = vpop.f32.mrf.mxu1 }
 0x1ce   : > { %614 = vst.msk [vmem:[%s1421_s19 + $0x60] sm:$0xff] %vm601_vm1, %v582_v3 }
 0x1cf   : > { %v1053_v4 = vpop.f32.mrf.mxu1 }
 0x1d0   : > { %617 = vst.msk [vmem:[%s1421_s19 + $0x78] sm:$0xff] %vm601_vm1, %v1053_v4 }
 0x1d1   : > { %v592_v5 = vpop.f32.mrf.mxu1 }
 0x1d2   : > { %616 = vst.msk [vmem:[%s1421_s19 + $0x70] sm:$0xff] %vm601_vm1, %v592_v5 }
 0x1d3 PF: > { %p1092_p5 = scmp.ge.s32.totalorder %s1201_s18, 2  ;;  %s736_s25 = sand.u32 1, %s1189_s15  }
 0x1d4   : > { %s737_s29 = scalar_lea.sflag [#allocation3], %s736_s25 }
 0x1d5   : > { %p1089_p13 = pnand %p1092_p5, %p1273_p6 }
 0x1d7   : > { %p1090_p0 = pneg %p1089_p13 }
 0x1d9   : > { %1184 = dma.done.wait (%p1090_p0), %s737_s29, 1024  }
 0x1da   : > { %1186 = vsyncadd (%p1090_p0), %s737_s29, 4294966272  ;;  %p15_p1 = scmp.ge.s32.totalorder %s1256_s21, 4   ;;  %s1479_s15 = smov %s1193_s16 }
 0x1db   : > { %s1480_s16 = smov %s1197_s17  ;;  %s1481_s17 = smov %s1267_s24 }
 0x1dc   : > { %s1482_s18 = smov %s1256_s21  ;;  %17 = sbr.rel (!%p15_p1) target bundleno = 3 (0x3), region = 79 }
 0x1e1   :  { %750 = vsyncpa [#allocation3], 1 }
 0x1e2   :  { %752 = vsyncpa [#allocation3 + $0x1], 1 }

</bundles_post_ra>
